<compile_context>
chip_gen: v7x
topology: tpu7x:2x2x1
jax: 0.10.0
libtpu: 0.0.40
codegen_flags: <defaults>
</compile_context>

<pallas_src>
import functools

import jax
import jax.numpy as jnp
from jax.experimental import pallas as pl
from jax.experimental.pallas import tpu as pltpu


def _linear_average_kernel(scale_ref, feat_ref, mem_t_ref, out_ref, *, eps):
    # scale_ref : (1,)    f32 in SMEM (temp)
    # feat_ref  : (tb, D) block of feat
    # mem_t_ref : (D, tn) lane-dense slab of memory^T
    # out_ref   : (tb, tn) output tile
    feat = feat_ref[...].astype(jnp.float32)

    # F.normalize(feat, p=2, dim=1): x / max(||x||_2, eps).  Fold the `temp`
    # scale into the (tb, 1) factor so no per-output-tile multiply is needed.
    norm = jnp.sqrt(jnp.sum(feat * feat, axis=-1, keepdims=True))
    feat_scaled = feat * (scale_ref[0] / jnp.maximum(norm, eps))

    # (tb, D) @ (D, tn) on the MXU, f32 accumulation, RHS used in place.
    out_ref[...] = jnp.dot(
        feat_scaled,
        mem_t_ref[...].astype(jnp.float32),
        preferred_element_type=jnp.float32,
    ).astype(out_ref.dtype)


def _pick_tile(dim, requested, align):
    """Largest tile <= requested that divides dim, preferring `align` multiples."""
    t = min(requested, dim)
    if t >= dim:
        return dim  # full extent is always layout-legal
    start = t - (t % align) if t >= align else 0
    for cand in range(start, 0, -align):
        if dim % cand == 0:
            return cand
    return dim  # fall back to full extent (always legal, if larger than asked)


def linear_average_forward(feat, memory_t, temp, *, tn=512, tb=256, eps=1e-12):
    """Pallas implementation of LinearAverage.forward.

    feat:     (B, D) float32
    memory_t: (D, N) float32   -- memory stored transposed (lane-dense tiles)
    returns   (B, N) float32
    """
    B, D = feat.shape
    D2, N = memory_t.shape
    assert D == D2, "feat_dim mismatch between feat and memory"

    tb = _pick_tile(B, tb, 8)
    tn = _pick_tile(N, tn, 128)

    # Keep double-buffered tiles comfortably inside the scoped-VMEM budget
    # (conservative for v7x's 64 MiB physical and v5e's 16 MiB default).
    vmem_limit = 32 * 1024 * 1024
    budget = 20 * 1024 * 1024

    def _tile_bytes(tn_):
        # double-buffered: memory slab + output tile + feat block
        return 4 * 2 * (D * tn_ + tb * tn_ + tb * D)

    while _tile_bytes(tn) > budget and tn % 256 == 0:
        tn //= 2  # halving preserves divisibility of N and 128-alignment

    grid = (B // tb, N // tn)
    scale = jnp.asarray(temp, dtype=jnp.float32).reshape((1,))

    kernel = functools.partial(_linear_average_kernel, eps=float(eps))

    cost = pl.CostEstimate(
        flops=2 * B * N * D,
        transcendentals=0,
        bytes_accessed=4 * (N * D + B * N + B * D),
    )

    return pl.pallas_call(
        kernel,
        out_shape=jax.ShapeDtypeStruct((B, N), jnp.float32),
        grid_spec=pltpu.PrefetchScalarGridSpec(
            num_scalar_prefetch=0,
            grid=grid,
            in_specs=[
                # temp as an SMEM scalar (traced-value friendly)
                pl.BlockSpec(memory_space=pltpu.MemorySpace.SMEM),
                # feat block, resident across the N-tile axis
                pl.BlockSpec((tb, D), lambda i, j: (i, 0)),
                # lane-dense (D, tn) slab of memory^T per grid step
                pl.BlockSpec((D, tn), lambda i, j: (0, j)),
            ],
            out_specs=pl.BlockSpec((tb, tn), lambda i, j: (i, j)),
        ),
        compiler_params=pltpu.CompilerParams(
            dimension_semantics=("parallel", "parallel"),
            vmem_limit_bytes=vmem_limit,
        ),
        cost_estimate=cost,
    )(scale, feat, memory_t)


class LinearAverage:
    """JAX/Pallas port of the PyTorch LinearAverage module (forward only)."""

    def __init__(self, feat_dim, n_data, temp, momentum, key):
        self.n_data = n_data
        self.mul = temp
        self.momentum = momentum
        # register_buffer('memory', torch.randn(n_data, feat_dim).float())
        self.memory = jax.random.normal(key, (n_data, feat_dim), dtype=jnp.float32)
        # Transposed copy built once (lane-dense (D, N) layout for the kernel).
        self.memory_t = jnp.asarray(self.memory.T)
        # register_buffer('labels', torch.zeros(n_data).long())
        self.labels = jnp.zeros((n_data,), dtype=jnp.int32)

    def forward(self, feat, index=None):
        # `index` is only consumed by update_weight in the PyTorch module.
        return linear_average_forward(feat, self.memory_t, self.mul)

    # TODO(synk): update_weight (momentum EMA scatter into `memory`) is not part
    # of the forward pass and is left unimplemented.


def _reference_forward(feat, memory, temp, eps=1e-12):
    norm = jnp.sqrt(jnp.sum(feat * feat, axis=-1, keepdims=True))
    feat_n = feat / jnp.maximum(norm, eps)
    return feat_n @ memory.T * temp


if __name__ == "__main__":
    key = jax.random.PRNGKey(0)
    k_mem, k_feat, k_mem2, k_feat2 = jax.random.split(key, 4)

    # Test 1: small shapes consistent with the module.
    batch, feat_dim, n_data, temp, momentum = 8, 32, 128, 0.05, 0.5
    module = LinearAverage(feat_dim, n_data, temp, momentum, k_mem)
    feat = jax.random.normal(k_feat, (batch, feat_dim), dtype=jnp.float32)
    index = jnp.arange(batch, dtype=jnp.int32)  # unused by forward
    out = jax.block_until_ready(module.forward(feat, index))
    ref = _reference_forward(feat, module.memory, temp)
    assert out.shape == (batch, n_data)
    assert jnp.allclose(out, ref, atol=1e-4, rtol=1e-4), "mismatch vs reference (test 1)"

    # Test 2: exercises a multi-tile grid on the n_data axis.
    batch2, feat_dim2, n_data2 = 16, 64, 1024
    mem2 = jax.random.normal(k_mem2, (n_data2, feat_dim2), dtype=jnp.float32)
    feat2 = jax.random.normal(k_feat2, (batch2, feat_dim2), dtype=jnp.float32)
    out2 = jax.block_until_ready(
        linear_average_forward(feat2, jnp.asarray(mem2.T), temp, tn=256)
    )
    ref2 = _reference_forward(feat2, mem2, temp)
    assert out2.shape == (batch2, n_data2)
    assert jnp.allclose(out2, ref2, atol=1e-4, rtol=1e-4), "mismatch vs reference (test 2)"

    print("KERNEL_OK")
</pallas_src>

<mosaic_0001>
module attributes {stable_mosaic.version = 11 : i64} {
  func.func @_linear_average_kernel(%arg0: i32, %arg1: i32, %arg2: memref<1xf32, #tpu.memory_space<smem>>, %arg3: memref<8x32xf32, #tpu.memory_space<vmem>>, %arg4: memref<32x128xf32, #tpu.memory_space<vmem>>, %arg5: memref<8x128xf32, #tpu.memory_space<vmem>>) attributes {dimension_semantics = [#tpu.dimension_semantics<parallel>, #tpu.dimension_semantics<parallel>], iteration_bounds = array<i64: 1, 1>, scalar_prefetch = 0 : i64, scratch_operands = 0 : i64, tpu.core_type = #tpu.core_type<tc>, window_params = [{transform_indices = @transform_0, window_bounds = array<i64: 1>}, {transform_indices = @transform_1, window_bounds = array<i64: 8, 32>}, {transform_indices = @transform_2, window_bounds = array<i64: 32, 128>}, {transform_indices = @transform_3, window_bounds = array<i64: 8, 128>}]} {
    %c0 = arith.constant 0 : index
    %c0_0 = arith.constant 0 : index
    %0 = vector.load %arg3[%c0, %c0_0] : memref<8x32xf32, #tpu.memory_space<vmem>>, vector<8x32xf32>
    %1 = arith.mulf %0, %0 : vector<8x32xf32>
    %cst = arith.constant dense<0.000000e+00> : vector<8xf32>
    %2 = vector.multi_reduction <add>, %1, %cst [1] : vector<8x32xf32> to vector<8xf32>
    %3 = vector.shape_cast %2 : vector<8xf32> to vector<8x1xf32>
    %4 = math.sqrt %3 : vector<8x1xf32>
    %c0_1 = arith.constant 0 : index
    %5 = memref.load %arg2[%c0_1] : memref<1xf32, #tpu.memory_space<smem>>
    %cst_2 = arith.constant 9.99999996E-13 : f32
    %6 = vector.broadcast %cst_2 : f32 to vector<8x1xf32>
    %7 = arith.maximumf %4, %6 : vector<8x1xf32>
    %8 = vector.broadcast %5 : f32 to vector<8x1xf32>
    %9 = arith.divf %8, %7 : vector<8x1xf32>
    %10 = vector.broadcast %9 : vector<8x1xf32> to vector<8x32xf32>
    %11 = arith.mulf %0, %10 : vector<8x32xf32>
    %c0_3 = arith.constant 0 : index
    %c0_4 = arith.constant 0 : index
    %12 = vector.load %arg4[%c0_3, %c0_4] : memref<32x128xf32, #tpu.memory_space<vmem>>, vector<32x128xf32>
    %cst_5 = arith.constant dense<0.000000e+00> : vector<8x128xf32>
    %13 = tpu.matmul %11, %12, %cst_5 {dimension_numbers = #tpu.dot_dimension_numbers<[1], [0], [0], [1], [0, 0, 1, 1], [], []>} : vector<8x32xf32>, vector<32x128xf32>, vector<8x128xf32> -> vector<8x128xf32>
    %c0_6 = arith.constant 0 : index
    %c0_7 = arith.constant 0 : index
    %14 = vector.load %arg5[%c0_6, %c0_7] : memref<8x128xf32, #tpu.memory_space<vmem>>, vector<8x128xf32>
    tpu.vector_store %arg5[%c0_6, %c0_7], %13 {strides = array<i32>} : memref<8x128xf32, #tpu.memory_space<vmem>>, vector<8x128xf32>,
    return
  }
  func.func @transform_0(%arg0: i32, %arg1: i32) -> i32 {
    %c0_i32 = arith.constant 0 : i32
    %c0_i32_0 = arith.constant 0 : i32
    return %c0_i32 : i32
  }
  func.func @transform_1(%arg0: i32, %arg1: i32) -> (i32, i32) {
    %c0_i32 = arith.constant 0 : i32
    %c0_i32_0 = arith.constant 0 : i32
    return %arg0, %c0_i32 : i32, i32
  }
  func.func @transform_2(%arg0: i32, %arg1: i32) -> (i32, i32) {
    %c0_i32 = arith.constant 0 : i32
    %c0_i32_0 = arith.constant 0 : i32
    return %c0_i32, %arg1 : i32, i32
  }
  func.func @transform_3(%arg0: i32, %arg1: i32) -> (i32, i32) {
    %c0_i32 = arith.constant 0 : i32
    return %arg0, %arg1 : i32, i32
  }
}

</mosaic_0001>

<bundles_post_ra>
// kernel: tpu_custom_call.1
= control target key start
LH: loop header
LB: loop body
LE: loop exit
PB: predicated region body
PF: predicated region fallthrough
CT: control target
= control target key end

     0   :  { %9 = vsyncpa [#allocation4], 0  ;;  %s338_s0 = inlined_call_operand.<no memory space> [shape: f32[1], index: 0, kind: input, shape index: {}]   ;;  %s339_s1 = inlined_call_operand.hbm [shape: f32[8,32], index: 1, kind: input, shape index: {}]   ;;  %s340_s2 = inlined_call_operand.hbm [shape: f32[32,128], index: 2, kind: input, shape index: {}]   ;;  %s341_s3 = inlined_call_operand.hbm [shape: f32[8,128], index: 3, kind: output, shape index: {}]  }
   0x1   :  { %10 = vsyncpa [#allocation7], 0 }
   0x2   :  { %11 = vsyncpa [#allocation5], 0  ;;  %s262_s12 = smov [#allocation3]   ;;  %s263_s14 = smov [#allocation6]  }
   0x3   :  { %s20_s13 = sshll.u32 %s262_s12, 4  ;;  %s29_s15 = sshll.u32 %s263_s14, 4  ;;  %s21_s13 = int_to_ptr.vmem [resolvable:$true] %s20_s13  ;;  %s290_s15 = int_to_ptr.vmem [resolvable:$true] %s29_s15 }
   0x4   :  { %s190_s18 = scalar_lea.hbm %s339_s1, 128 }
   0x5   :  { %p191_p0 = scmp.ne.s32.totalorder %s339_s1, %s190_s18  ;;  %p194_p1 = scmp.lt.u32.totalorder %s190_s18, %s339_s1 }
   0x7   :  { %p196_p2 = pnand %p194_p1, %p191_p0 }
   0x9   :  { %199 = shalt.err (!%p196_p2)
}
   0xa   :  { %s200_s23 = scalar_lea.vmem %s21_s13, 128  ;;  %p205_p4 = scmp.lt.s32.totalorder %s21_s13, %s21_s13 }
   0xb   :  { %p201_p3 = scmp.ne.s32.totalorder %s21_s13, %s200_s23  ;;  %p206_p5 = scmp.lt.s32.totalorder %s200_s23, %s200_s23 }
   0xd   :  { %p207_p6 = por %p206_p5, %p205_p4 }
   0xf   :  { %p208_p7 = pnand %p207_p6, %p201_p3 }
  0x11   :  { %211 = shalt.err (!%p208_p7)
}
  0x12   :  { %23 = dma.hbm_to_vmem [thread:$0]  %s339_s1, 128, %s21_s13, [#allocation4]  }
  0x13   :  { %s212_s28 = scalar_lea.hbm %s340_s2, 512 }
  0x14   :  { %p213_p8 = scmp.ne.s32.totalorder %s340_s2, %s212_s28  ;;  %p216_p9 = scmp.lt.u32.totalorder %s212_s28, %s340_s2 }
  0x16   :  { %p218_p10 = pnand %p216_p9, %p213_p8 }
  0x18   :  { %221 = shalt.err (!%p218_p10)
}
  0x19   :  { %s222_s6 = scalar_lea.vmem %s290_s15, 512  ;;  %p227_p12 = scmp.lt.s32.totalorder %s290_s15, %s290_s15 }
  0x1a   :  { %p223_p11 = scmp.ne.s32.totalorder %s290_s15, %s222_s6  ;;  %p228_p13 = scmp.lt.s32.totalorder %s222_s6, %s222_s6 }
  0x1c   :  { %p229_p0 = por %p228_p13, %p227_p12 }
  0x1e   :  { %p230_p1 = pnand %p229_p0, %p223_p11 }
  0x20   :  { %233 = shalt.err (!%p230_p1)
}
  0x21   :  { %s264_s1 = smov 128   ;;  %s265_s7 = smov 8  }
  0x22   :  { %35 = dma.hbm_to_vmem [thread:$0]  %s340_s2, 512, %s290_s15, [#allocation7], %s264_s1, %s264_s1, %s265_s7  }
  0x23   :  { %256 = dma.done.wait [#allocation4], 128  }
  0x24   :  { %257 = vsyncadd [#allocation4], 4294967168 }
  0x25   :  { %258 = dma.done.wait [#allocation7], 512  }
  0x26   :  { %259 = vsyncadd [#allocation7], 4294966784  ;;  %v42_v0 = vld [vmem:[#allocation3] sm:$0xff]  ;;  %vm44_vm0 = vcmask 261120   ;;  %v61_v3 = vld [vmem:[#allocation6] sm:$0xff]  ;;  %v266_v6 = vmov 0.0|0.0   ;;  %v57_v18 = vstv %s338_s0 }
  0x27   :  { %v43_v1 = vmul.f32 %v42_v0, %v42_v0  ;;  %v62_v4 = vld [vmem:[#allocation6 + $0x8] sm:$0xff]  ;;  %v63_v5 = vld [vmem:[#allocation6 + $0x10] sm:$0xff]  ;;  %172 = vmatprep.subr.bf16.mxu0 %v266_v6  ;;  %v64_v8 = vld [vmem:[#allocation6 + $0x18] sm:$0xff]  ;;  %vm267_vm1 = vmmov 0   ;;  %v268_v9 = vmov 0.0   ;;  %s269_s11 = smov [#allocation8]  }
  0x28   :  { %v173_v7 = vpack.c.bf16 %v62_v4, %v61_v3  ;;  %169 = vmatprep.mubr.msk.f32.mxu0 %vm267_vm1, %v268_v9  ;;  %v176_v10 = vpack.c.bf16 %v64_v8, %v63_v5  ;;  %s145_s12 = sshll.u32 %s269_s11, 4  ;;  %s146_s12 = int_to_ptr.vmem [resolvable:$true] %s145_s12 }
  0x29   :  { %v45_v2 = vsel %vm44_vm0, %v43_v1, 0.0  ;;  %s234_s13 = scalar_lea.vmem %s146_s12, 128  ;;  %p239_p3 = scmp.lt.s32.totalorder %s146_s12, %s146_s12 }
  0x2a   :  { %46 = vadd.xlane.f32.xlu0 %v45_v2  ;;  %174 = vmatpush3.bf16.msra.mxu0 %v173_v7  ;;  %p235_p2 = scmp.ne.s32.totalorder %s146_s12, %s234_s13  ;;  %p240_p4 = scmp.lt.s32.totalorder %s234_s13, %s234_s13 }
  0x2b   :  { %175 = vmatprep.subr.bf16.mxu0 %v266_v6 }
  0x2c   :  { %p241_p5 = por %p240_p4, %p239_p3 }
  0x2e   :  { %177 = vmatpush3.bf16.msra.mxu0 %v176_v10  ;;  %p242_p6 = pnand %p241_p5, %p235_p2 }
  0xb7   :  { %v47_v11 = vpop.xlane.xlu0 %46 }
  0xb8   :  { %186 = vrsqrt.f32 %v47_v11  ;;  %vm50_vm2 = vcmp.eq.f32.partialorder %v47_v11, inf  ;;  %v53_v14 = vand.u32 2147483648, %v47_v11  ;;  %vm52_vm3 = vcmp.eq.f32.partialorder %v47_v11, 0.0 }
  0xc2   :  { %v187_v12 = vpop.eup %186 }
  0xc3   :  { %v49_v13 = vmul.f32 %v187_v12, %v47_v11 }
  0xc5   :  { %v51_v15 = vsel %vm50_vm2, %v47_v11, %v49_v13 }
  0xc6   :  { %v54_v16 = vsel %vm52_vm3, %v53_v14, %v51_v15 }
  0xc7   :  { %v56_v17 = vmax.f32 %v54_v16, 1e-12 }
  0xc9   :  { %188 = vrcp.f32 %v56_v17 }
  0xd3   :  { %v189_v19 = vpop.eup %188 }
  0xd4   :  { %v59_v20 = vmul.f32 %v189_v19, %v57_v18 }
  0xd6   :  { %v60_v21 = vmul.f32 %v59_v20, %v42_v0 }
  0xd8   :  { %170 = vmatmul.mubr.msk.f32.vlgmr.msra.gmra.mrb[0].mxu0 %vm44_vm0, %v60_v21 }
 0x1ab   :  { %v134_v22 = vpop.f32.mrb[0].mxu0 }
 0x1ac   :  { %138 = vst [vmem:[#allocation8] sm:$0xff] %v134_v22  ;;  %v171_v23 = vpop.f32.mrb[1].mxu0 }
 0x1ad   :  { %245 = shalt.err (!%p242_p6)
}
 0x1ae   :  { %s246_s15 = scalar_lea.hbm %s341_s3, 128 }
 0x1af   :  { %p247_p7 = scmp.ne.s32.totalorder %s341_s3, %s246_s15  ;;  %p250_p8 = scmp.lt.u32.totalorder %s246_s15, %s341_s3 }
 0x1b1   :  { %p252_p9 = pnand %p250_p8, %p247_p7 }
 0x1b3   :  { %255 = shalt.err (!%p252_p9)
}
 0x1b4   :  { %148 = dma.vmem_to_hbm [thread:$0]  %s146_s12, 128, %s341_s3, [#allocation5]  }
 0x1b5   :  { %260 = dma.done.wait [#allocation5], 128  }
 0x1b6   :  { %261 = vsyncadd [#allocation5], 4294967168 }
 0x1b7   :  { %152 = vsyncpa [#allocation4], 1 }
 0x1b8   :  { %153 = vsyncpa [#allocation7], 1 }
 0x1b9   :  { %154 = vsyncpa [#allocation5], 1 }

</bundles_post_ra>
